<compile_context>
chip_gen: v7x
topology: tpu7x:2x2x1
jax: 0.10.0
libtpu: 0.0.40
codegen_flags: <defaults>
</compile_context>

<pallas_src>
import functools

import jax
import jax.numpy as jnp
import numpy as np
from jax.experimental import pallas as pl
from jax.experimental.pallas import tpu as pltpu


# ---------------------------------------------------------------------------
# helpers
# ---------------------------------------------------------------------------
def _round_up(x, m):
    return ((x + m - 1) // m) * m


def _pad2d(x, rows, cols):
    r, c = x.shape
    return jnp.pad(x, ((0, rows - r), (0, cols - c)))


_VMEM_CAP = None


def _vmem_capacity_bytes():
    """Physical VMEM of the current TPU generation (conservative fallback)."""
    global _VMEM_CAP
    if _VMEM_CAP is None:
        try:
            _VMEM_CAP = int(pltpu.get_tpu_info().vmem_capacity_bytes)
        except Exception:  # pragma: no cover - conservative default (v7x-sized)
            _VMEM_CAP = 64 * 1024 * 1024
    return _VMEM_CAP


def _compiler_params(dim_sem):
    cap = _vmem_capacity_bytes()
    limit = int(min(cap * 3 // 4, 100 * 1024 * 1024))  # ~96 MiB v5e/v6e, ~48 MiB v7x
    return pltpu.CompilerParams(dimension_semantics=dim_sem,
                                vmem_limit_bytes=limit)


def _pick_tile(n, desired):
    """Largest 128-multiple tile <= desired such that row-padding waste stays
    bounded (<=12.5%) and, when the data allows it, the axis still has >= 2
    tiles (so both v7x TensorCores get work via the 'parallel' grid axis)."""
    n128 = _round_up(max(n, 1), 128)
    for t in range(min(desired, n128), 0, -128):
        padded = _round_up(n128, t)
        if n128 > 128 and padded // t < 2:
            continue
        if padded <= n128 * 1.125:
            return t
    return 128


def _dropout_mask(key, shape, p):
    """Inverted-dropout keep mask (0 or 1/(1-p)), stored bf16 (exact for p=0.5)."""
    keep = jax.random.bernoulli(key, 1.0 - p, shape)
    return (keep.astype(jnp.float32) / jnp.float32(1.0 - p)).astype(jnp.bfloat16)


def _tile_tables(M, tile_r, tile_c):
    """Per-(row-tile, col-tile) occupancy + DMA-remap tables for a 0/1 matrix.
    occ[i,k] = 1 iff tile (i,k) contains any nonzero.
    rmp[i,k] = k if occ[i,k] else last nonempty col-tile <= k (clamped to 0),
    so that consecutive grid steps over empty tiles reuse the already-resident
    VMEM block and no new DMA is issued."""
    R, C = M.shape
    nr, nc = R // tile_r, C // tile_c
    occ = M.reshape(nr, tile_r, nc, tile_c).sum(axis=(1, 3)) > 0
    ks = jnp.arange(nc, dtype=jnp.int32)[None, :]
    cand = jnp.where(occ, ks, jnp.int32(-1))
    rmp = jnp.maximum(jax.lax.cummax(cand, axis=1), 0).astype(jnp.int32)
    return occ.astype(jnp.int32).reshape(-1), rmp.reshape(-1)


# ---------------------------------------------------------------------------
# Kernel L: lin_v + DV2 row scaling, hoisted out of the reduction loop.
#   grid = (node tiles,)  ->  Whs = DV2 . (vfeat @ Wv + bv)   (bf16 output)
# ---------------------------------------------------------------------------
def _linv_kernel(v_ref, wv_ref, bv_ref, dv2_ref, whs_ref):
    wh = jnp.dot(v_ref[...], wv_ref[...], preferred_element_type=jnp.float32)
    whs_ref[...] = ((wh + bv_ref[...]) * dv2_ref[...]).astype(whs_ref.dtype)


# ---------------------------------------------------------------------------
# Kernel A: node -> hyperedge aggregation (+ fused lin_e on the last layer).
#   grid = (edge tiles, node tiles); node axis is the reduction (innermost,
#   "arbitrary"); (tile_e, Dv) f32 accumulator in VMEM scratch; all-zero H
#   tiles are skipped via the prefetched occupancy table.
# ---------------------------------------------------------------------------
def _v2e_kernel(*refs, has_edge_lin, need_raw, n_k):
    occ_ref, _rmp_ref, hst_ref, whs_ref, invde_ref = refs[:5]
    idx = 5
    if has_edge_lin:
        we_ref, be_ref = refs[idx], refs[idx + 1]
        idx += 2
    efs_ref = refs[idx]
    idx += 1
    if has_edge_lin:
        eout_ref = refs[idx]
        idx += 1
    if need_raw:
        eraw_ref = refs[idx]
        idx += 1
    acc_ref = refs[idx]

    i, k = pl.program_id(0), pl.program_id(1)

    @pl.when(k == 0)
    def _():
        acc_ref[...] = jnp.zeros_like(acc_ref)

    @pl.when(occ_ref[i * n_k + k] != 0)          # skip all-zero incidence tiles
    def _():
        acc_ref[...] += jnp.dot(hst_ref[...], whs_ref[...],
                                preferred_element_type=jnp.float32)

    @pl.when(k == pl.num_programs(1) - 1)
    def _():
        acc = acc_ref[...]
        # invDE applied in f32 here; the bf16 copy feeds the edge->node kernel.
        efs_ref[...] = (invde_ref[...] * acc).astype(efs_ref.dtype)
        if has_edge_lin:
            eout_ref[...] = (
                jnp.dot(acc.astype(jnp.bfloat16), we_ref[...],
                        preferred_element_type=jnp.float32) + be_ref[...])
        if need_raw:
            eraw_ref[...] = acc


# ---------------------------------------------------------------------------
# Kernel B: hyperedge -> node aggregation + DV2 scaling + relu + dropout.
#   grid = (node tiles, edge tiles); edge axis is the reduction (innermost).
# ---------------------------------------------------------------------------
def _e2v_kernel(*refs, has_dropout, n_k):
    occ_ref, _rmp_ref, h_ref, efs_ref, dv2_ref = refs[:5]
    idx = 5
    if has_dropout:
        mask_ref = refs[idx]
        idx += 1
    vout_ref = refs[idx]
    acc_ref = refs[idx + 1]

    i, k = pl.program_id(0), pl.program_id(1)

    @pl.when(k == 0)
    def _():
        acc_ref[...] = jnp.zeros_like(acc_ref)

    @pl.when(occ_ref[i * n_k + k] != 0)          # skip all-zero incidence tiles
    def _():
        acc_ref[...] += jnp.dot(h_ref[...], efs_ref[...],
                                preferred_element_type=jnp.float32)

    @pl.when(k == pl.num_programs(1) - 1)
    def _():
        vt = jnp.maximum(dv2_ref[...] * acc_ref[...], 0.0)
        if has_dropout:
            vt = vt * mask_ref[...]
        vout_ref[...] = vt.astype(vout_ref.dtype)


# ---------------------------------------------------------------------------
# One HGNN layer = three pipelined pallas_calls (lin_v -> v2e -> e2v).
# ---------------------------------------------------------------------------
def hgnn_layer(graph, vfeat_p, Wv_p, bv_p, We_p=None, be_p=None, mask_p=None,
               *, need_raw=False):
    (hst_p, h_p, dv2_p, invde_p,
     occ_a, rmp_a, occ_b, rmp_b, tile_v, tile_e) = graph
    Nv_p, Din_p = vfeat_p.shape
    Ne_p = hst_p.shape[0]
    Dv_p = Wv_p.shape[1]
    nV, nE = Nv_p // tile_v, Ne_p // tile_e
    has_e = We_p is not None
    has_drop = mask_p is not None
    need_raw = need_raw and not has_e

    # ---- lin_v (hoisted; once per node tile) -------------------------------
    # TODO(synk): fuse into the previous layer's _e2v finalize to also save
    # the vfeat HBM round-trip between layers.
    whs = pl.pallas_call(
        _linv_kernel,
        grid=(nV,),
        in_specs=[pl.BlockSpec((tile_v, Din_p), lambda i: (i, 0)),
                  pl.BlockSpec((Din_p, Dv_p), lambda i: (0, 0)),
                  pl.BlockSpec((1, Dv_p), lambda i: (0, 0)),
                  pl.BlockSpec((tile_v, 1), lambda i: (i, 0))],
        out_specs=pl.BlockSpec((tile_v, Dv_p), lambda i: (i, 0)),
        out_shape=jax.ShapeDtypeStruct((Nv_p, Dv_p), jnp.bfloat16),
        compiler_params=_compiler_params(("parallel",)),
    )(vfeat_p, Wv_p, bv_p, dv2_p)

    # ---- kernel A: node -> hyperedge ---------------------------------------
    in_specs_a = [
        pl.BlockSpec((tile_e, tile_v),
                     lambda i, k, occ, rmp: (i, rmp[i * nV + k])),   # H^T (0/1 bf16)
        pl.BlockSpec((tile_v, Dv_p),
                     lambda i, k, occ, rmp: (rmp[i * nV + k], 0)),   # Whs (bf16)
        pl.BlockSpec((tile_e, 1), lambda i, k, occ, rmp: (i, 0)),    # invDE (f32)
    ]
    args_a = [hst_p, whs, invde_p]
    out_shape_a = [jax.ShapeDtypeStruct((Ne_p, Dv_p), jnp.bfloat16)]  # invDE-scaled ef
    out_specs_a = [pl.BlockSpec((tile_e, Dv_p), lambda i, k, occ, rmp: (i, 0))]
    if has_e:
        De_p = We_p.shape[1]
        in_specs_a += [pl.BlockSpec((Dv_p, De_p), lambda i, k, occ, rmp: (0, 0)),
                       pl.BlockSpec((1, De_p), lambda i, k, occ, rmp: (0, 0))]
        args_a += [We_p, be_p]
        out_shape_a.append(jax.ShapeDtypeStruct((Ne_p, De_p), jnp.float32))
        out_specs_a.append(pl.BlockSpec((tile_e, De_p), lambda i, k, occ, rmp: (i, 0)))
    if need_raw:
        out_shape_a.append(jax.ShapeDtypeStruct((Ne_p, Dv_p), jnp.float32))
        out_specs_a.append(pl.BlockSpec((tile_e, Dv_p), lambda i, k, occ, rmp: (i, 0)))

    res = pl.pallas_call(
        functools.partial(_v2e_kernel, has_edge_lin=has_e, need_raw=need_raw,
                          n_k=nV),
        grid_spec=pltpu.PrefetchScalarGridSpec(
            num_scalar_prefetch=2,
            grid=(nE, nV),
            in_specs=in_specs_a,
            out_specs=tuple(out_specs_a),
            scratch_shapes=[pltpu.VMEM((tile_e, Dv_p), jnp.float32)]),
        out_shape=tuple(out_shape_a),
        compiler_params=_compiler_params(("parallel", "arbitrary")),
    )(occ_a, rmp_a, *args_a)
    efs = res[0]
    eout = res[1] if has_e else None
    eraw = res[-1] if need_raw else None

    # ---- kernel B: hyperedge -> node + DV2 + relu + dropout ----------------
    in_specs_b = [
        pl.BlockSpec((tile_v, tile_e),
                     lambda i, k, occ, rmp: (i, rmp[i * nE + k])),   # H (0/1 bf16)
        pl.BlockSpec((tile_e, Dv_p),
                     lambda i, k, occ, rmp: (rmp[i * nE + k], 0)),   # invDE.ef (bf16)
        pl.BlockSpec((tile_v, 1), lambda i, k, occ, rmp: (i, 0)),    # DV2 (f32)
    ]
    args_b = [h_p, efs, dv2_p]
    if has_drop:
        in_specs_b.append(pl.BlockSpec((tile_v, Dv_p),
                                       lambda i, k, occ, rmp: (i, 0)))  # mask (bf16)
        args_b.append(mask_p)

    vout = pl.pallas_call(
        functools.partial(_e2v_kernel, has_dropout=has_drop, n_k=nE),
        grid_spec=pltpu.PrefetchScalarGridSpec(
            num_scalar_prefetch=2,
            grid=(nV, nE),
            in_specs=in_specs_b,
            out_specs=pl.BlockSpec((tile_v, Dv_p), lambda i, k, occ, rmp: (i, 0)),
            scratch_shapes=[pltpu.VMEM((tile_v, Dv_p), jnp.float32)]),
        out_shape=jax.ShapeDtypeStruct((Nv_p, Dv_p), jnp.bfloat16),
        compiler_params=_compiler_params(("parallel", "arbitrary")),
    )(occ_b, rmp_b, *args_b)

    return vout, eout, eraw


# ---------------------------------------------------------------------------
# Graph preprocessing shared by all layers of one forward pass.
# ---------------------------------------------------------------------------
def prepare_graph(H, DV2, invDE, desired_tile=None):
    Nv, Ne = H.shape
    if desired_tile is None:
        # 128-MiB-VMEM chips (v5e/v6e) take bigger tiles than v7x (64 MiB).
        desired_tile = 1024 if _vmem_capacity_bytes() >= 100 * 1024 * 1024 else 512
    tile_v = _pick_tile(Nv, desired_tile)
    tile_e = _pick_tile(Ne, desired_tile)
    Nv_p = _round_up(_round_up(Nv, 128), tile_v)
    Ne_p = _round_up(_round_up(Ne, 128), tile_e)

    Hp = _pad2d(H.astype(jnp.float32), Nv_p, Ne_p)   # exact 0/1, padded
    h_p = Hp.astype(jnp.bfloat16)                    # (Nv_p, Ne_p)
    hst_p = Hp.T.astype(jnp.bfloat16)                # (Ne_p, Nv_p)
    dv2_p = _pad2d(DV2.reshape(-1, 1).astype(jnp.float32), Nv_p, 1)
    invde_p = _pad2d(invDE.reshape(-1, 1).astype(jnp.float32), Ne_p, 1)

    occ_a, rmp_a = _tile_tables(Hp.T, tile_e, tile_v)   # edge-major (kernel A)
    occ_b, rmp_b = _tile_tables(Hp, tile_v, tile_e)     # node-major (kernel B)
    return (hst_p, h_p, dv2_p, invde_p, occ_a, rmp_a, occ_b, rmp_b,
            tile_v, tile_e)


# ---------------------------------------------------------------------------
# HGNN model: parameter init (torch.nn.Linear-style) + multi-layer forward.
# ---------------------------------------------------------------------------
def init_linear(key, in_dim, out_dim):
    k = 1.0 / np.sqrt(in_dim)
    kw, kb = jax.random.split(key)
    W = jax.random.uniform(kw, (in_dim, out_dim), jnp.float32, -k, k)
    b = jax.random.uniform(kb, (1, out_dim), jnp.float32, -k, k)
    return W, b


def init_hgnn_params(key, input_vdim, hidden_dim, output_vdim, output_edim,
                     num_layer=2, dropout=0.5):
    layers = []
    for i in range(num_layer):
        key, sub = jax.random.split(key)
        if num_layer == 1:
            in_d, v_d, e_d, p = input_vdim, output_vdim, output_edim, 0.0
        elif i == 0:
            in_d, v_d, e_d, p = input_vdim, hidden_dim, 0, 0.0
        elif i == num_layer - 1:
            in_d, v_d, e_d, p = hidden_dim, output_vdim, output_edim, dropout
        else:
            in_d, v_d, e_d, p = hidden_dim, hidden_dim, 0, dropout
        Wv, bv = init_linear(sub, in_d, v_d)
        if e_d > 0:
            key, sub = jax.random.split(key)
            We, be = init_linear(sub, v_d, e_d)
        else:
            We, be = None, None
        layers.append(dict(Wv=Wv, bv=bv, We=We, be=be, dropout=p))
    return layers


def hgnn_forward(layers, H, vfeat, efeat, DV2, invDE, key, desired_tile=None):
    """Multi-layer HGNN forward. Returns (vfeat_out, efeat_out, dropout_masks)."""
    del efeat  # the torch forward never reads its efeat argument either
    Nv, Ne = H.shape
    graph = prepare_graph(H, DV2, invDE, desired_tile=desired_tile)
    Ne_p, Nv_p = graph[0].shape

    v_p = _pad2d(vfeat.astype(jnp.float32), Nv_p,
                 _round_up(vfeat.shape[1], 128)).astype(jnp.bfloat16)

    masks = []
    eout = eraw = None
    n_layers = len(layers)
    for i, lyr in enumerate(layers):
        Wv, bv = lyr["Wv"], lyr["bv"]
        in_d, v_d = Wv.shape
        Din_p, Dv_p = _round_up(in_d, 128), _round_up(v_d, 128)
        Wv_p = _pad2d(Wv, Din_p, Dv_p).astype(jnp.bfloat16)
        bv_p = _pad2d(bv, 1, Dv_p)                               # f32
        We_p = be_p = None
        if lyr["We"] is not None:
            e_d = lyr["We"].shape[1]
            We_p = _pad2d(lyr["We"], Dv_p, _round_up(e_d, 128)).astype(jnp.bfloat16)
            be_p = _pad2d(lyr["be"], 1, _round_up(e_d, 128))     # f32
        mask_p = None
        if lyr["dropout"] > 0.0:
            mask_p = _dropout_mask(jax.random.fold_in(key, i),
                                   (Nv_p, Dv_p), lyr["dropout"])
            masks.append(mask_p[:Nv, :v_d].astype(jnp.float32))
        else:
            masks.append(None)

        need_raw = (i == n_layers - 1) and (lyr["We"] is None)
        v_p, eout, eraw = hgnn_layer(graph, v_p, Wv_p, bv_p, We_p, be_p,
                                     mask_p, need_raw=need_raw)

    out_vdim = layers[-1]["Wv"].shape[1]
    vfeat_out = v_p[:Nv, :out_vdim].astype(jnp.float32)
    if layers[-1]["We"] is not None:
        efeat_out = eout[:Ne, :layers[-1]["We"].shape[1]]
    else:
        efeat_out = eraw[:Ne, :out_vdim]
    return vfeat_out, efeat_out, masks


# Pure-JAX f32 reference of one layer (for correctness checking).
def ref_layer(H, vfeat, dv2, invde, Wv, bv, We=None, be=None, mask=None):
    wh = vfeat @ Wv + bv
    ef = H.T @ (dv2 * wh)
    vt = jnp.maximum(dv2 * (H @ (invde * ef)), 0.0)
    if mask is not None:
        vt = vt * mask
    eo = ef @ We + be if We is not None else ef
    return vt, eo


if __name__ == "__main__":
    # Small, deterministic problem.
    Nv, Ne = 16, 8                       # nodes, hyperedges
    input_vdim, input_edim = 8, 8
    hidden_dim, output_vdim, output_edim = 32, 16, 8
    num_layer, dropout = 2, 0.5

    key = jax.random.PRNGKey(0)
    k_feat, k_efeat, k_params, k_drop = jax.random.split(key, 4)

    # Deterministic incidence matrix: each node belongs to 2 hyperedges.
    H_np = np.zeros((Nv, Ne), dtype=np.float32)
    for v in range(Nv):
        H_np[v, v % Ne] = 1.0
        H_np[v, (v + 3) % Ne] = 1.0
    H = jnp.asarray(H_np)

    DV = H.sum(axis=1)                                   # node degrees
    DE = H.sum(axis=0)                                   # hyperedge degrees
    DV2 = jnp.where(DV > 0, DV ** -0.5, 0.0)             # D_v^{-1/2} (guarded)
    invDE = jnp.where(DE > 0, 1.0 / jnp.maximum(DE, 1.0), 0.0)  # D_e^{-1} (guarded)

    vfeat = jax.random.normal(k_feat, (Nv, input_vdim), jnp.float32)
    efeat = jax.random.normal(k_efeat, (Ne, input_edim), jnp.float32)  # unused (as in torch)

    layers = init_hgnn_params(k_params, input_vdim, hidden_dim,
                              output_vdim, output_edim,
                              num_layer=num_layer, dropout=dropout)

    vout, eout, masks = hgnn_forward(layers, H, vfeat, efeat, DV2, invDE, k_drop)
    vout = jax.block_until_ready(vout)
    eout = jax.block_until_ready(eout)

    # --- correctness check against a pure-JAX f32 reference (same dropout
    # mask, since the mask is generated host-side and returned) --------------
    dv2 = DV2.reshape(-1, 1)
    ide = invDE.reshape(-1, 1)
    v1_ref, _ = ref_layer(H, vfeat, dv2, ide,
                          layers[0]["Wv"], layers[0]["bv"])          # layer 0: no dropout
    v2_ref, e2_ref = ref_layer(H, v1_ref, dv2, ide,
                               layers[1]["Wv"], layers[1]["bv"],
                               layers[1]["We"], layers[1]["be"],
                               mask=masks[1])                        # layer 1: dropout 0.5
    # bf16 MXU operands / bf16 streamed intermediates => relaxed tolerances.
    np.testing.assert_allclose(np.asarray(eout), np.asarray(e2_ref),
                               rtol=5e-2, atol=5e-2)
    np.testing.assert_allclose(np.asarray(vout), np.asarray(v2_ref),
                               rtol=5e-2, atol=5e-2)
    assert vout.shape == (Nv, output_vdim) and eout.shape == (Ne, output_edim)

    print("KERNEL_OK")
</pallas_src>

<mosaic_0001>
module attributes {stable_mosaic.version = 11 : i64} {
  func.func @_linv_kernel(%arg0: i32, %arg1: memref<128x128xbf16, #tpu.memory_space<vmem>>, %arg2: memref<128x128xbf16, #tpu.memory_space<vmem>>, %arg3: memref<1x128xf32, #tpu.memory_space<vmem>>, %arg4: memref<128x1xf32, #tpu.memory_space<vmem>>, %arg5: memref<128x128xbf16, #tpu.memory_space<vmem>>) attributes {dimension_semantics = [#tpu.dimension_semantics<parallel>], iteration_bounds = array<i64: 1>, scalar_prefetch = 0 : i64, scratch_operands = 0 : i64, tpu.core_type = #tpu.core_type<tc>, window_params = [{transform_indices = @transform_0, window_bounds = array<i64: 128, 128>}, {pipeline_mode = #tpu.pipeline_mode<synchronous>, transform_indices = @transform_1, window_bounds = array<i64: 128, 128>}, {pipeline_mode = #tpu.pipeline_mode<synchronous>, transform_indices = @transform_2, window_bounds = array<i64: 1, 128>}, {transform_indices = @transform_3, window_bounds = array<i64: 128, 1>}, {transform_indices = @transform_4, window_bounds = array<i64: 128, 128>}]} {
    %c0 = arith.constant 0 : index
    %c0_0 = arith.constant 0 : index
    %0 = vector.load %arg1[%c0, %c0_0] : memref<128x128xbf16, #tpu.memory_space<vmem>>, vector<128x128xbf16>
    %c0_1 = arith.constant 0 : index
    %c0_2 = arith.constant 0 : index
    %1 = vector.load %arg2[%c0_1, %c0_2] : memref<128x128xbf16, #tpu.memory_space<vmem>>, vector<128x128xbf16>
    %cst = arith.constant dense<0.000000e+00> : vector<128x128xf32>
    %2 = tpu.matmul %0, %1, %cst {dimension_numbers = #tpu.dot_dimension_numbers<[1], [0], [0], [1], [0, 0, 1, 1], [], []>} : vector<128x128xbf16>, vector<128x128xbf16>, vector<128x128xf32> -> vector<128x128xf32>
    %c0_3 = arith.constant 0 : index
    %c0_4 = arith.constant 0 : index
    %3 = vector.load %arg3[%c0_3, %c0_4] : memref<1x128xf32, #tpu.memory_space<vmem>>, vector<1x128xf32>
    %4 = vector.broadcast %3 : vector<1x128xf32> to vector<128x128xf32>
    %5 = arith.addf %2, %4 : vector<128x128xf32>
    %c0_5 = arith.constant 0 : index
    %c0_6 = arith.constant 0 : index
    %6 = vector.load %arg4[%c0_5, %c0_6] : memref<128x1xf32, #tpu.memory_space<vmem>>, vector<128x1xf32>
    %7 = vector.broadcast %6 : vector<128x1xf32> to vector<128x128xf32>
    %8 = arith.mulf %5, %7 : vector<128x128xf32>
    %9 = arith.truncf %8 : vector<128x128xf32> to vector<128x128xbf16>
    %c0_7 = arith.constant 0 : index
    %c0_8 = arith.constant 0 : index
    %10 = vector.load %arg5[%c0_7, %c0_8] : memref<128x128xbf16, #tpu.memory_space<vmem>>, vector<128x128xbf16>
    tpu.vector_store %arg5[%c0_7, %c0_8], %9 {strides = array<i32>} : memref<128x128xbf16, #tpu.memory_space<vmem>>, vector<128x128xbf16>,
    return
  }
  func.func @transform_0(%arg0: i32) -> (i32, i32) {
    %c0_i32 = arith.constant 0 : i32
    %c0_i32_0 = arith.constant 0 : i32
    return %arg0, %c0_i32 : i32, i32
  }
  func.func @transform_1(%arg0: i32) -> (i32, i32) {
    %c0_i32 = arith.constant 0 : i32
    %c0_i32_0 = arith.constant 0 : i32
    %c0_i32_1 = arith.constant 0 : i32
    return %c0_i32, %c0_i32_0 : i32, i32
  }
  func.func @transform_2(%arg0: i32) -> (i32, i32) {
    %c0_i32 = arith.constant 0 : i32
    %c0_i32_0 = arith.constant 0 : i32
    %c0_i32_1 = arith.constant 0 : i32
    return %c0_i32, %c0_i32_0 : i32, i32
  }
  func.func @transform_3(%arg0: i32) -> (i32, i32) {
    %c0_i32 = arith.constant 0 : i32
    %c0_i32_0 = arith.constant 0 : i32
    return %arg0, %c0_i32 : i32, i32
  }
  func.func @transform_4(%arg0: i32) -> (i32, i32) {
    %c0_i32 = arith.constant 0 : i32
    %c0_i32_0 = arith.constant 0 : i32
    return %arg0, %c0_i32 : i32, i32
  }
}

</mosaic_0001>

<bundles_post_ra>
// kernel: tpu_custom_call.1
= control target key start
LH: loop header
LB: loop body
LE: loop exit
PB: predicated region body
PF: predicated region fallthrough
CT: control target
= control target key end

     0   :  { %v665_v2 = vmov 0   ;;  %s814_s0 = inlined_call_operand.vmem [shape: bf16[128,128], index: 0, kind: input, shape index: {}]   ;;  %s815_s1 = inlined_call_operand.vmem [shape: bf16[128,128], index: 1, kind: input, shape index: {}]   ;;  %s816_s2 = inlined_call_operand.vmem [shape: f32[1,128], index: 2, kind: input, shape index: {}]   ;;  %s817_s3 = inlined_call_operand.vmem [shape: f32[128,1], index: 3, kind: input, shape index: {}]   ;;  %s818_s4 = inlined_call_operand.hbm [shape: bf16[128,128], index: 4, kind: output, shape index: {}]  }
   0x1   :  { %v625_v0 = vld [vmem:[%s815_s1] sm:$0xff]   ;;  %v626_v1 = vld [vmem:[%s815_s1 + $0x8] sm:$0xff]   ;;  %624 = vset.pattern.permute.xlu1 %v665_v2  ;;  %623 = vset.pattern.permute.xlu0 %v665_v2  ;;  %v627_v3 = vld [vmem:[%s815_s1 + $0x10] sm:$0xff]  }
   0x2   :  { %571 = vmatprep.subr.bf16.mxu0 %v625_v0  ;;  %603 = vmatprep.subr.bf16.mxu1 %v625_v0  ;;  %v628_v4 = vld [vmem:[%s815_s1 + $0x18] sm:$0xff]   ;;  %v633_v5 = vld [vmem:[%s814_s0] sm:$0xff]   ;;  %v630_v8 = vld [vmem:[%s815_s1 + $0x28] sm:$0xff]  }
   0x3   :  { %572 = vmatpush3.bf16.msra.mxu0 %v625_v0  ;;  %611 = vmatpush3.bf16.msra.mxu1 %v625_v0  ;;  %v634_v6 = vld [vmem:[%s814_s0 + $0x20] sm:$0xff]   ;;  %v253_v9 = vld [vmem:[%s817_s3 + $0x10] sm:$0xff]  ;;  %v254_v11 = vld [vmem:[%s817_s3 + $0x18] sm:$0xff] }
   0x4   :  { %573 = vmatprep.subr.bf16.mxu0 %v626_v1  ;;  %604 = vmatprep.subr.bf16.mxu1 %v626_v1  ;;  %v629_v7 = vld [vmem:[%s815_s1 + $0x20] sm:$0xff]   ;;  %v252_v12 = vld [vmem:[%s817_s3 + $0x8] sm:$0xff]  ;;  %v631_v13 = vld [vmem:[%s815_s1 + $0x30] sm:$0xff]  }
   0x5   :  { %587 = vmatprep.mubr.bf16.mxu0 %v633_v5  ;;  %595 = vmatprep.mubr.bf16.mxu1 %v634_v6  ;;  %v251_v10 = vld [vmem:[%s817_s3] sm:$0xff] }
   0x6   :  { %279 = vperm.xlu1 %624, %v253_v9   ;;  %269 = vperm.xlu0 %623, %v251_v10  }
   0x7   :  { %574 = vmatpush3.bf16.msra.mxu0 %v626_v1  ;;  %612 = vmatpush3.bf16.msra.mxu1 %v626_v1 }
   0x8   :  { %575 = vmatprep.subr.bf16.mxu0 %v627_v3  ;;  %605 = vmatprep.subr.bf16.mxu1 %v627_v3 }
   0xa   :  { %284 = vperm.xlu1 %624, %v254_v11   ;;  %274 = vperm.xlu0 %623, %v252_v12  }
   0xb   :  { %576 = vmatpush3.bf16.msra.mxu0 %v627_v3  ;;  %613 = vmatpush3.bf16.msra.mxu1 %v627_v3 }
   0xc   :  { %577 = vmatprep.subr.bf16.mxu0 %v628_v4  ;;  %606 = vmatprep.subr.bf16.mxu1 %v628_v4 }
   0xf   :  { %578 = vmatpush3.bf16.msra.mxu0 %v628_v4  ;;  %614 = vmatpush3.bf16.msra.mxu1 %v628_v4 }
  0x10   :  { %579 = vmatprep.subr.bf16.mxu0 %v629_v7  ;;  %607 = vmatprep.subr.bf16.mxu1 %v629_v7 }
  0x13   :  { %580 = vmatpush3.bf16.msra.mxu0 %v629_v7  ;;  %615 = vmatpush3.bf16.msra.mxu1 %v629_v7 }
  0x14   :  { %581 = vmatprep.subr.bf16.mxu0 %v630_v8  ;;  %608 = vmatprep.subr.bf16.mxu1 %v630_v8 }
  0x15   :  { %9 = vsyncpa [#allocation3], 0  ;;  %v256_v14 = vld [vmem:[%s817_s3 + $0x28] sm:$0xff]  ;;  %v255_v15 = vld [vmem:[%s817_s3 + $0x20] sm:$0xff] }
  0x16   :  { %v632_v16 = vld [vmem:[%s815_s1 + $0x38] sm:$0xff]   ;;  %294 = vperm.xlu1 %624, %v256_v14   ;;  %289 = vperm.xlu0 %623, %v255_v15   ;;  %v257_v18 = vld [vmem:[%s817_s3 + $0x30] sm:$0xff]  ;;  %v635_v19 = vld [vmem:[%s814_s0 + $0x8] sm:$0xff]  }
  0x17   :  { %582 = vmatpush3.bf16.msra.mxu0 %v630_v8  ;;  %616 = vmatpush3.bf16.msra.mxu1 %v630_v8  ;;  %v258_v17 = vld [vmem:[%s817_s3 + $0x38] sm:$0xff]  ;;  %v636_v20 = vld [vmem:[%s814_s0 + $0x28] sm:$0xff]   ;;  %v259_v22 = vld [vmem:[%s817_s3 + $0x40] sm:$0xff] }
  0x18   :  { %583 = vmatprep.subr.bf16.mxu0 %v631_v13  ;;  %609 = vmatprep.subr.bf16.mxu1 %v631_v13  ;;  %v260_v21 = vld [vmem:[%s817_s3 + $0x48] sm:$0xff]  ;;  %v637_v23 = vld [vmem:[%s814_s0 + $0x10] sm:$0xff]   ;;  %v262_v25 = vld [vmem:[%s817_s3 + $0x58] sm:$0xff] }
  0x19   :  { %v638_v24 = vld [vmem:[%s814_s0 + $0x30] sm:$0xff]   ;;  %v639_v27 = vld [vmem:[%s814_s0 + $0x18] sm:$0xff]   ;;  %v264_v29 = vld [vmem:[%s817_s3 + $0x68] sm:$0xff] }
  0x1a   :  { %304 = vperm.xlu1 %624, %v258_v17   ;;  %299 = vperm.xlu0 %623, %v257_v18   ;;  %v261_v26 = vld [vmem:[%s817_s3 + $0x50] sm:$0xff]  ;;  %v640_v28 = vld [vmem:[%s814_s0 + $0x38] sm:$0xff]   ;;  %v263_v30 = vld [vmem:[%s817_s3 + $0x60] sm:$0xff] }
  0x1b   :  { %584 = vmatpush3.bf16.msra.mxu0 %v631_v13  ;;  %617 = vmatpush3.bf16.msra.mxu1 %v631_v13  ;;  %v266_v31 = vld [vmem:[%s817_s3 + $0x78] sm:$0xff]  ;;  %v265_v32 = vld [vmem:[%s817_s3 + $0x70] sm:$0xff]  ;;  %v459_v43 = vld [vmem:[%s816_s2] ss:$0 sm:$0xff]  ;;  %s666_s2 = smov [#allocation2]  }
  0x1c   :  { %585 = vmatprep.subr.bf16.mxu0 %v632_v16  ;;  %610 = vmatprep.subr.bf16.mxu1 %v632_v16  ;;  %s448_s3 = sshll.u32 %s666_s2, 4  ;;  %s449_s3 = int_to_ptr.vmem [resolvable:$true] %s448_s3 }
  0x1d   :  { %s641_s1 = scalar_lea.vmem %s449_s3, 1024  ;;  %p646_p1 = scmp.lt.s32.totalorder %s449_s3, %s449_s3 }
  0x1e   :  { %314 = vperm.xlu1 %624, %v260_v21   ;;  %309 = vperm.xlu0 %623, %v259_v22   ;;  %p642_p0 = scmp.ne.s32.totalorder %s449_s3, %s641_s1  ;;  %p647_p2 = scmp.lt.s32.totalorder %s641_s1, %s641_s1 }
  0x1f   :  { %586 = vmatpush3.bf16.msra.mxu0 %v632_v16  ;;  %618 = vmatpush3.bf16.msra.mxu1 %v632_v16 }
  0x20   :  { %p648_p3 = por %p647_p2, %p646_p1 }
  0x22   :  { %588 = vmatmul.mubr.bf16.vlgmr.msra.gmra.mrb[0].mxu0 %v635_v19  ;;  %596 = vmatmul.mubr.bf16.vlgmr.msra.gmra.mrb[0].mxu1 %v636_v20  ;;  %p649_p4 = pnand %p648_p3, %p642_p0 }
  0x23   :  { %591 = vmatprep.mubr.bf16.mxu0 %v637_v23  ;;  %599 = vmatprep.mubr.bf16.mxu1 %v638_v24 }
  0x24   :  { %324 = vperm.xlu1 %624, %v262_v25   ;;  %319 = vperm.xlu0 %623, %v261_v26  }
  0x28   :  { %334 = vperm.xlu1 %624, %v264_v29   ;;  %329 = vperm.xlu0 %623, %v263_v30  }
  0x2a   :  { %592 = vmatmul.mubr.bf16.gmra.mrb[4].mxu0 %v639_v27  ;;  %600 = vmatmul.mubr.bf16.gmra.mrb[4].mxu1 %v640_v28 }
  0x2c   :  { %344 = vperm.xlu1 %624, %v266_v31   ;;  %339 = vperm.xlu0 %623, %v265_v32  }
  0x85   :  { %v280_v33 = vpop.permute.xlu1 %279  ;;  %v270_v34 = vpop.permute.xlu0 %269 }
  0x89   :  { %v285_v35 = vpop.permute.xlu1 %284  ;;  %v275_v36 = vpop.permute.xlu0 %274 }
  0x95   :  { %v790_v37 = vpop.permute.xlu1 %294  ;;  %v792_v38 = vpop.permute.xlu0 %289 }
  0x99   :  { %v794_v39 = vpop.permute.xlu1 %304  ;;  %v300_v40 = vpop.permute.xlu0 %299 }
  0x9d   :  { %v315_v41 = vpop.permute.xlu1 %314  ;;  %v310_v42 = vpop.permute.xlu0 %309 }
  0xa3   :  { %v325_v44 = vpop.permute.xlu1 %324  ;;  %v320_v45 = vpop.permute.xlu0 %319 }
  0xa7   :  { %v335_v2 = vpop.permute.xlu1 %334  ;;  %v330_v3 = vpop.permute.xlu0 %329 }
  0xab   :  { %v345_v26 = vpop.permute.xlu1 %344  ;;  %v340_v27 = vpop.permute.xlu0 %339 }
  0xf5   :  { %v589_v46 = vpop.f32.mrb[0].mxu0  ;;  %v597_v47 = vpop.f32.mrb[0].mxu1 }
  0xf6   :  { %v197_v48 = vadd.f32 %v589_v46, %v459_v43  ;;  %v229_v49 = vadd.f32 %v597_v47, %v459_v43  ;;  %v188_v50 = vpop.f32.mrb[1].mxu0  ;;  %v220_v51 = vpop.f32.mrb[1].mxu1 }
  0xf7   :  { %v189_v52 = vadd.f32 %v459_v43, %v188_v50  ;;  %v221_v53 = vadd.f32 %v459_v43, %v220_v51  ;;  %v590_v54 = vpop.f32.mrb[2].mxu0  ;;  %v598_v55 = vpop.f32.mrb[2].mxu1 }
  0xf8   :  { %v200_v56 = vadd.f32 %v590_v54, %v459_v43  ;;  %v232_v57 = vadd.f32 %v598_v55, %v459_v43  ;;  %v191_v58 = vpop.f32.mrb[3].mxu0  ;;  %v223_v59 = vpop.f32.mrb[3].mxu1  ;;  %v349_v62 = vmul.f32 %v280_v33, %v197_v48  ;;  %v357_v63 = vmul.f32 %v320_v45, %v229_v49 }
  0xf9   :  { %v192_v60 = vadd.f32 %v459_v43, %v191_v58  ;;  %v224_v61 = vadd.f32 %v459_v43, %v223_v59  ;;  %v347_v4 = vmul.f32 %v270_v34, %v189_v52  ;;  %v355_v5 = vmul.f32 %v310_v42, %v221_v53 }
  0xfa   :  { %v350_v0 = vmul.f32 %v285_v35, %v200_v56  ;;  %v358_v1 = vmul.f32 %v325_v44, %v232_v57 }
  0xfb   :  { %v348_v6 = vmul.f32 %v275_v36, %v192_v60  ;;  %v356_v7 = vmul.f32 %v315_v41, %v224_v61 }
  0xfc   :  { %v516_v8 = vpack.c.bf16 %v350_v0, %v349_v62  ;;  %v536_v9 = vpack.c.bf16 %v358_v1, %v357_v63 }
  0xfd   :  { %v511_v10 = vpack.c.bf16 %v348_v6, %v347_v4  ;;  %v531_v11 = vpack.c.bf16 %v356_v7, %v355_v5  ;;  %v593_v12 = vpop.f32.mrb[4].mxu0  ;;  %v601_v13 = vpop.f32.mrb[4].mxu1 }
  0xfe   :  { %548 = vst [vmem:[#allocation2 + $0x8] sm:$0xff] %v516_v8   ;;  %552 = vst [vmem:[#allocation2 + $0x28] sm:$0xff] %v536_v9   ;;  %v213_v14 = vadd.f32 %v593_v12, %v459_v43  ;;  %v245_v15 = vadd.f32 %v601_v13, %v459_v43  ;;  %v204_v16 = vpop.f32.mrb[5].mxu0  ;;  %v236_v17 = vpop.f32.mrb[5].mxu1 }
  0xff   :  { %512 = vst [vmem:[#allocation2] sm:$0xff] %v511_v10   ;;  %551 = vst [vmem:[#allocation2 + $0x20] sm:$0xff] %v531_v11   ;;  %v205_v18 = vadd.f32 %v459_v43, %v204_v16  ;;  %v237_v19 = vadd.f32 %v459_v43, %v236_v17  ;;  %v594_v20 = vpop.f32.mrb[6].mxu0  ;;  %v602_v21 = vpop.f32.mrb[6].mxu1 }
 0x100   :  { %v216_v22 = vadd.f32 %v594_v20, %v459_v43  ;;  %v248_v23 = vadd.f32 %v602_v21, %v459_v43  ;;  %v207_v24 = vpop.f32.mrb[7].mxu0  ;;  %v239_v25 = vpop.f32.mrb[7].mxu1  ;;  %v353_v30 = vmul.f32 %v300_v40, %v213_v14  ;;  %v361_v31 = vmul.f32 %v340_v27, %v245_v15 }
 0x101   :  { %v208_v28 = vadd.f32 %v459_v43, %v207_v24  ;;  %v240_v29 = vadd.f32 %v459_v43, %v239_v25  ;;  %v351_v34 = vmul.f32 %v792_v38, %v205_v18  ;;  %v359_v35 = vmul.f32 %v330_v3, %v237_v19 }
 0x102   :  { %v354_v32 = vmul.f32 %v794_v39, %v216_v22  ;;  %v362_v33 = vmul.f32 %v345_v26, %v248_v23 }
 0x103   :  { %v352_v36 = vmul.f32 %v790_v37, %v208_v28  ;;  %v360_v41 = vmul.f32 %v335_v2, %v240_v29 }
 0x104   :  { %v526_v42 = vpack.c.bf16 %v354_v32, %v353_v30  ;;  %v546_v44 = vpack.c.bf16 %v362_v33, %v361_v31 }
 0x105   :  { %v521_v45 = vpack.c.bf16 %v352_v36, %v351_v34  ;;  %v541_v46 = vpack.c.bf16 %v360_v41, %v359_v35 }
 0x106   :  { %550 = vst [vmem:[#allocation2 + $0x18] sm:$0xff] %v526_v42   ;;  %554 = vst [vmem:[#allocation2 + $0x38] sm:$0xff] %v546_v44  }
 0x107   :  { %549 = vst [vmem:[#allocation2 + $0x10] sm:$0xff] %v521_v45   ;;  %553 = vst [vmem:[#allocation2 + $0x30] sm:$0xff] %v541_v46  }
 0x108   :  { %652 = shalt.err (!%p649_p4)
}
 0x109   :  { %s653_s29 = scalar_lea.hbm %s818_s4, 1024 }
 0x10a   :  { %p654_p5 = scmp.ne.s32.totalorder %s818_s4, %s653_s29  ;;  %p657_p6 = scmp.lt.u32.totalorder %s653_s29, %s818_s4 }
 0x10c   :  { %p659_p7 = pnand %p657_p6, %p654_p5 }
 0x10e   :  { %662 = shalt.err (!%p659_p7)
}
 0x10f   :  { %s667_s8 = smov 64   ;;  %s668_s9 = smov 4  }
 0x110   :  { %454 = dma.vmem_to_hbm [thread:$0]  %s449_s3, 1024, %s818_s4, [#allocation3], %s667_s8, %s667_s8, %s668_s9  }
 0x111   :  { %663 = dma.done.wait [#allocation3], 1024  }
 0x112   :  { %664 = vsyncadd [#allocation3], 4294966272 }
 0x113   :  { %458 = vsyncpa [#allocation3], 1 }

</bundles_post_ra>
